<compile_context>
chip_gen: v5e
topology: v5e:2x2
jax: 0.10.0
libtpu: 0.0.40
codegen_flags: <defaults>
</compile_context>

<pallas_src>
import functools
import math

import jax
import jax.numpy as jnp
from jax import lax
from jax.experimental import pallas as pl
from jax.experimental.pallas import tpu as pltpu


NEG_INF = -1e30  # large finite negative: robust even if a mask row were all-zero


# ----------------------------- Pallas kernel ---------------------------------

def mha_kernel(q_ref, k_ref, v_ref,
               wq_ref, bq_ref, wk_ref, bk_ref, wv_ref, bv_ref,
               wo_ref, bo_ref,
               o_ref,
               *, num_heads: int, head_dim: int, n_agents: int,
               block_batches: int, masked: bool, compute_dtype):
    H, hd = num_heads, head_dim                      # head_dim here is the (padded) width
    rows = block_batches * n_agents
    exact_div = jnp.dtype(compute_dtype) == jnp.dtype(jnp.float32)

    x_q = q_ref[...]                                 # (rows, d) already compute_dtype
    x_k = k_ref[...]
    x_v = v_ref[...]

    # --- fused full-width projections: one MXU matmul per activation, f32 accumulate.
    # 1/sqrt(head_dim) is already folded into wq/bq by the wrapper.
    qp = (jnp.dot(x_q, wq_ref[...], preferred_element_type=jnp.float32)
          + bq_ref[...]).astype(compute_dtype)
    kp = (jnp.dot(x_k, wk_ref[...], preferred_element_type=jnp.float32)
          + bk_ref[...]).astype(compute_dtype)
    vp = (jnp.dot(x_v, wv_ref[...], preferred_element_type=jnp.float32)
          + bv_ref[...]).astype(compute_dtype)

    # --- fold heads into the batch dim: (rows, H*hd) -> (H*TB, n, hd), head-major.
    def to_heads(x2d):
        pieces = [x2d[:, h * hd:(h + 1) * hd].reshape(block_batches, n_agents, hd)
                  for h in range(H)]
        return jnp.concatenate(pieces, axis=0)

    q3 = to_heads(qp)
    k3 = to_heads(kp)
    v3 = to_heads(vp)

    # scores[g, i, j] = q3[g, i, :] . k3[g, j, :]   (scale pre-folded into W_Q)
    scores = lax.dot_general(q3, k3, (((2,), (2,)), ((0,), (0,))),
                             preferred_element_type=jnp.float32)

    if masked:
        row_ids = lax.broadcasted_iota(jnp.int32, (1, n_agents, n_agents), 1)
        col_ids = lax.broadcasted_iota(jnp.int32, (1, n_agents, n_agents), 2)
        scores = jnp.where(col_ids <= row_ids, scores, NEG_INF)

    # Numerically stable softmax (f32) over the whole (H*TB, n, n) tensor.
    m = jnp.max(scores, axis=-1, keepdims=True)
    e = jnp.exp(scores - m)
    denom = jnp.sum(e, axis=-1, keepdims=True)
    if exact_div:
        probs = e / denom                            # exact path for f32 verification
    else:
        probs = e * pl.reciprocal(denom, approx=True)   # EUP slot, ~free
    probs = probs.astype(compute_dtype)

    # (H*TB, n, n) @ (H*TB, n, hd) -> (H*TB, n, hd)
    attn = lax.dot_general(probs, v3, (((2,), (1,)), ((0,), (0,))),
                           preferred_element_type=jnp.float32)
    attn = attn.astype(compute_dtype).reshape(H, rows, hd)

    # --- re-pack heads onto lanes (single relayout) + ONE output projection.
    attn2d = jnp.concatenate([attn[h] for h in range(H)], axis=-1)   # (rows, H*hd)
    out = (jnp.dot(attn2d, wo_ref[...], preferred_element_type=jnp.float32)
           + bo_ref[...])
    o_ref[...] = out.astype(o_ref.dtype)


# ------------------------------- wrapper --------------------------------------

def _plan_head_padding(model_dim: int, num_heads: int, head_dim: int):
    """Pad head_dim so num_heads*hd_pad is a multiple of 128 (lane-dense blocks and
    stores), unless the padding would blow up compute (awkward head counts)."""
    if model_dim % 128 == 0:
        return head_dim, model_dim
    step = 128 // math.gcd(num_heads, 128)
    hd_pad = -(-head_dim // step) * step
    d_pad = num_heads * hd_pad
    if d_pad > max(256, 2 * (-(-model_dim // 128) * 128)):
        return head_dim, model_dim        # still correct, just lane-sparse
    return hd_pad, d_pad


def _vmem_budget_bytes() -> int:
    cap = 64 * 1024 * 1024                # conservative fallback (v7x per-core VMEM)
    try:
        info = pltpu.get_tpu_info()
        cap = int(getattr(info, "vmem_capacity_bytes", cap))
    except Exception:
        pass
    return int(min(cap, 128 * 1024 * 1024) * 0.6)


def _choose_block_batches(bs: int, n_agents: int, d_pad: int, num_heads: int,
                          in_isz: int, out_isz: int, target_rows: int,
                          budget_bytes: int) -> int:
    """Batches per block: divides bs, rows multiple of 8 (or the full array), fits the
    VMEM budget, and prefers an even number of grid steps (v7x has 2 TensorCores)."""
    def vmem_estimate(tb):
        rows = tb * n_agents
        blocks = (3 * 2 * rows * d_pad * in_isz         # q/k/v blocks, double-buffered
                  + 2 * rows * d_pad * out_isz)         # output block, double-buffered
        weights = 2 * 4 * d_pad * d_pad * in_isz + 2 * 4 * d_pad * 4
        inter = (3 * rows * d_pad * (4 + in_isz)        # f32 projections + head-stacked
                 + 2 * num_heads * tb * n_agents * n_agents * 4   # scores + probs
                 + 2 * rows * d_pad * 4)                # attn output / O-proj accum
        return blocks + weights + inter

    def ok(tb):
        rows = tb * n_agents
        return (bs % tb == 0
                and (rows % 8 == 0 or tb == bs)
                and rows <= max(target_rows, n_agents)
                and vmem_estimate(tb) <= budget_bytes)

    candidates = [tb for tb in range(1, bs + 1) if ok(tb)]
    if not candidates:
        legal = [tb for tb in range(1, bs + 1)
                 if bs % tb == 0 and ((tb * n_agents) % 8 == 0 or tb == bs)]
        return min(legal) if legal else bs
    even = [t for t in candidates if (bs // t) >= 2 and (bs // t) % 2 == 0]
    multi = [t for t in candidates if (bs // t) >= 2]
    if even:
        return max(even)
    if multi:
        return max(multi)
    return max(candidates)


def multi_head_attention(Q, K, V, params, *, num_heads: int, masked: bool,
                         compute_dtype=jnp.bfloat16, target_block_rows: int = 1024,
                         vmem_limit_bytes=None):
    """Forward pass of MultiHeadAttention.  Call under jax.jit so the weight prep is
    constant-folded/fused and not re-materialized in HBM every call."""
    bs, n_agents, model_dim = Q.shape
    assert model_dim % num_heads == 0
    head_dim = model_dim // num_heads
    total_rows = bs * n_agents
    compute_dtype = jnp.dtype(compute_dtype)

    hd_pad, d_pad = _plan_head_padding(model_dim, num_heads, head_dim)
    pad_in = d_pad - model_dim
    pad_hd = hd_pad - head_dim
    scale = 1.0 / math.sqrt(head_dim)

    # ---- weight prep: pad to lane-dense layout, fold the softmax scale into W_Q/b_Q.
    def prep_qkv(w, b, fold_scale):
        w = w.astype(jnp.float32).reshape(model_dim, num_heads, head_dim)
        b = b.reshape(num_heads, head_dim).astype(jnp.float32)
        if fold_scale:
            w = w * scale
            b = b * scale
        w = jnp.pad(w, ((0, pad_in), (0, 0), (0, pad_hd))).reshape(d_pad, d_pad)
        b = jnp.pad(b, ((0, 0), (0, pad_hd))).reshape(1, d_pad)
        return w.astype(compute_dtype), b

    wq, bq = prep_qkv(params["wq"], params["bq"], True)
    wk, bk = prep_qkv(params["wk"], params["bk"], False)
    wv, bv = prep_qkv(params["wv"], params["bv"], False)

    wo = params["wo"].astype(jnp.float32).reshape(num_heads, head_dim, model_dim)
    wo = jnp.pad(wo, ((0, 0), (0, pad_hd), (0, pad_in))).reshape(d_pad, d_pad)
    wo = wo.astype(compute_dtype)
    bo = jnp.pad(params["bo"].reshape(1, model_dim).astype(jnp.float32),
                 ((0, 0), (0, pad_in)))

    # ---- activations: flatten (bs, n, d) -> (rows, d), cast to compute dtype, pad lanes.
    def prep_x(x):
        x2 = x.reshape(total_rows, model_dim).astype(compute_dtype)
        if pad_in:
            x2 = jnp.pad(x2, ((0, 0), (0, pad_in)))
        return x2

    q2, k2, v2 = prep_x(Q), prep_x(K), prep_x(V)

    in_isz = compute_dtype.itemsize
    out_isz = jnp.dtype(Q.dtype).itemsize
    budget = _vmem_budget_bytes()
    tb = _choose_block_batches(bs, n_agents, d_pad, num_heads, in_isz, out_isz,
                               target_block_rows, budget)
    block_rows = tb * n_agents
    grid = (total_rows // block_rows,)
    if vmem_limit_bytes is None:
        vmem_limit_bytes = budget

    x_spec = pl.BlockSpec((block_rows, d_pad), lambda i: (i, 0))
    w_spec = pl.BlockSpec((d_pad, d_pad), lambda i: (0, 0))
    b_spec = pl.BlockSpec((1, d_pad), lambda i: (0, 0))

    kernel = functools.partial(
        mha_kernel, num_heads=num_heads, head_dim=hd_pad, n_agents=n_agents,
        block_batches=tb, masked=masked, compute_dtype=compute_dtype)

    out2 = pl.pallas_call(
        kernel,
        out_shape=jax.ShapeDtypeStruct((total_rows, d_pad), Q.dtype),
        grid_spec=pltpu.PrefetchScalarGridSpec(
            num_scalar_prefetch=0,
            grid=grid,
            in_specs=[x_spec, x_spec, x_spec,
                      w_spec, b_spec, w_spec, b_spec, w_spec, b_spec,
                      w_spec, b_spec],
            out_specs=x_spec,
        ),
        compiler_params=pltpu.CompilerParams(
            dimension_semantics=("parallel",),
            vmem_limit_bytes=int(vmem_limit_bytes),
        ),
    )(q2, k2, v2, wq, bq, wk, bk, wv, bv, wo, bo)

    out = out2[:, :model_dim] if pad_in else out2
    return out.reshape(bs, n_agents, model_dim)


# ------------------------- deterministic parameter init -----------------------

def orthogonal_weight(key, dim, gain=1.0):
    # Mirrors nn.init.orthogonal_ (QR of a normal matrix, sign-corrected); gain('linear')==1.
    a = jax.random.normal(key, (dim, dim), dtype=jnp.float32)
    q, r = jnp.linalg.qr(a)
    q = q * jnp.sign(jnp.diag(r))[None, :]
    return gain * q


def init_params(key, model_dim):
    keys = jax.random.split(key, 4)
    params = {}
    for name, k in zip(["q", "k", "v", "o"], keys):
        w = orthogonal_weight(k, model_dim)          # torch Linear weight (out, in)
        params[f"w{name}"] = w.T                     # pre-transpose -> (in, out)
        params[f"b{name}"] = jnp.zeros((1, model_dim), jnp.float32)
    return params


# ------------------------------ pure-JAX reference ----------------------------

def mha_reference(Q, K, V, params, *, num_heads: int, masked: bool,
                  compute_dtype=jnp.float32):
    bs, n, d = Q.shape
    hd = d // num_heads
    c = lambda x: x.astype(compute_dtype)

    def proj(x, w, b):
        return jnp.dot(c(x), c(w), preferred_element_type=jnp.float32) + b

    def split(x):
        return x.reshape(bs, n, num_heads, hd).transpose(0, 2, 1, 3)

    q = split(proj(Q, params["wq"], params["bq"]))
    k = split(proj(K, params["wk"], params["bk"]))
    v = split(proj(V, params["wv"], params["bv"]))

    scores = jnp.einsum("bhqd,bhkd->bhqk", c(q), c(k),
                        preferred_element_type=jnp.float32) / math.sqrt(hd)
    if masked:
        tril = jnp.tril(jnp.ones((n, n)))
        scores = jnp.where(tril == 0, NEG_INF, scores)
    probs = jax.nn.softmax(scores, axis=-1)
    attn = jnp.einsum("bhqk,bhkd->bhqd", c(probs), c(v),
                      preferred_element_type=jnp.float32)
    attn = attn.transpose(0, 2, 1, 3).reshape(bs, n, d)
    return proj(attn, params["wo"], params["bo"])


# ----------------------------------- main --------------------------------------

if __name__ == "__main__":
    model_dim = 32
    num_heads = 4
    masked = True
    bs, n_agents = 4, 8      # small example; wrapper blocks batches (even grid of 2 steps)

    key = jax.random.PRNGKey(0)
    kq, kk, kv, kp = jax.random.split(key, 4)
    Q = jax.random.normal(kq, (bs, n_agents, model_dim), dtype=jnp.float32)
    K = jax.random.normal(kk, (bs, n_agents, model_dim), dtype=jnp.float32)
    V = jax.random.normal(kv, (bs, n_agents, model_dim), dtype=jnp.float32)
    params = init_params(kp, model_dim)

    # 1) f32 verification path (exact softmax divide) vs f32 reference.
    fwd_f32 = jax.jit(functools.partial(multi_head_attention, num_heads=num_heads,
                                        masked=masked, compute_dtype=jnp.float32))
    out_f32 = jax.block_until_ready(fwd_f32(Q, K, V, params))
    ref_f32 = mha_reference(Q, K, V, params, num_heads=num_heads, masked=masked)
    assert out_f32.shape == (bs, n_agents, model_dim)
    assert jnp.allclose(out_f32, ref_f32, atol=1e-4, rtol=1e-4), "f32 kernel mismatch"

    # 2) Default bf16 MXU fast path vs a bf16-matmul reference.  Loose tolerance covers
    #    bf16 operand rounding, accumulation order, and the EUP approx reciprocal.
    fwd_bf16 = jax.jit(functools.partial(multi_head_attention, num_heads=num_heads,
                                         masked=masked))
    out_bf16 = jax.block_until_ready(fwd_bf16(Q, K, V, params))
    ref_bf16 = mha_reference(Q, K, V, params, num_heads=num_heads, masked=masked,
                             compute_dtype=jnp.bfloat16)
    assert jnp.allclose(out_bf16, ref_bf16, atol=5e-2, rtol=5e-2), "bf16 kernel mismatch"

    print("KERNEL_OK")
</pallas_src>

<mosaic_0001>
module attributes {stable_mosaic.version = 11 : i64} {
  func.func @mha_kernel(%arg0: i32, %arg1: memref<16x128xf32, #tpu.memory_space<vmem>>, %arg2: memref<16x128xf32, #tpu.memory_space<vmem>>, %arg3: memref<16x128xf32, #tpu.memory_space<vmem>>, %arg4: memref<128x128xf32, #tpu.memory_space<vmem>>, %arg5: memref<1x128xf32, #tpu.memory_space<vmem>>, %arg6: memref<128x128xf32, #tpu.memory_space<vmem>>, %arg7: memref<1x128xf32, #tpu.memory_space<vmem>>, %arg8: memref<128x128xf32, #tpu.memory_space<vmem>>, %arg9: memref<1x128xf32, #tpu.memory_space<vmem>>, %arg10: memref<128x128xf32, #tpu.memory_space<vmem>>, %arg11: memref<1x128xf32, #tpu.memory_space<vmem>>, %arg12: memref<16x128xf32, #tpu.memory_space<vmem>>) attributes {dimension_semantics = [#tpu.dimension_semantics<parallel>], iteration_bounds = array<i64: 2>, scalar_prefetch = 0 : i64, scratch_operands = 0 : i64, tpu.core_type = #tpu.core_type<tc>, window_params = [{transform_indices = @transform_0, window_bounds = array<i64: 16, 128>}, {transform_indices = @transform_1, window_bounds = array<i64: 16, 128>}, {transform_indices = @transform_2, window_bounds = array<i64: 16, 128>}, {pipeline_mode = #tpu.pipeline_mode<synchronous>, transform_indices = @transform_3, window_bounds = array<i64: 128, 128>}, {pipeline_mode = #tpu.pipeline_mode<synchronous>, transform_indices = @transform_4, window_bounds = array<i64: 1, 128>}, {pipeline_mode = #tpu.pipeline_mode<synchronous>, transform_indices = @transform_5, window_bounds = array<i64: 128, 128>}, {pipeline_mode = #tpu.pipeline_mode<synchronous>, transform_indices = @transform_6, window_bounds = array<i64: 1, 128>}, {pipeline_mode = #tpu.pipeline_mode<synchronous>, transform_indices = @transform_7, window_bounds = array<i64: 128, 128>}, {pipeline_mode = #tpu.pipeline_mode<synchronous>, transform_indices = @transform_8, window_bounds = array<i64: 1, 128>}, {pipeline_mode = #tpu.pipeline_mode<synchronous>, transform_indices = @transform_9, window_bounds = array<i64: 128, 128>}, {pipeline_mode = #tpu.pipeline_mode<synchronous>, transform_indices = @transform_10, window_bounds = array<i64: 1, 128>}, {transform_indices = @transform_11, window_bounds = array<i64: 16, 128>}]} {
    %c0 = arith.constant 0 : index
    %c0_0 = arith.constant 0 : index
    %0 = vector.load %arg1[%c0, %c0_0] : memref<16x128xf32, #tpu.memory_space<vmem>>, vector<16x128xf32>
    %c0_1 = arith.constant 0 : index
    %c0_2 = arith.constant 0 : index
    %1 = vector.load %arg2[%c0_1, %c0_2] : memref<16x128xf32, #tpu.memory_space<vmem>>, vector<16x128xf32>
    %c0_3 = arith.constant 0 : index
    %c0_4 = arith.constant 0 : index
    %2 = vector.load %arg3[%c0_3, %c0_4] : memref<16x128xf32, #tpu.memory_space<vmem>>, vector<16x128xf32>
    %c0_5 = arith.constant 0 : index
    %c0_6 = arith.constant 0 : index
    %3 = vector.load %arg4[%c0_5, %c0_6] : memref<128x128xf32, #tpu.memory_space<vmem>>, vector<128x128xf32>
    %cst = arith.constant dense<0.000000e+00> : vector<16x128xf32>
    %4 = tpu.matmul %0, %3, %cst {dimension_numbers = #tpu.dot_dimension_numbers<[1], [0], [0], [1], [0, 0, 1, 1], [], []>} : vector<16x128xf32>, vector<128x128xf32>, vector<16x128xf32> -> vector<16x128xf32>
    %c0_7 = arith.constant 0 : index
    %c0_8 = arith.constant 0 : index
    %5 = vector.load %arg5[%c0_7, %c0_8] : memref<1x128xf32, #tpu.memory_space<vmem>>, vector<1x128xf32>
    %6 = vector.broadcast %5 : vector<1x128xf32> to vector<16x128xf32>
    %7 = arith.addf %4, %6 : vector<16x128xf32>
    %c0_9 = arith.constant 0 : index
    %c0_10 = arith.constant 0 : index
    %8 = vector.load %arg6[%c0_9, %c0_10] : memref<128x128xf32, #tpu.memory_space<vmem>>, vector<128x128xf32>
    %cst_11 = arith.constant dense<0.000000e+00> : vector<16x128xf32>
    %9 = tpu.matmul %1, %8, %cst_11 {dimension_numbers = #tpu.dot_dimension_numbers<[1], [0], [0], [1], [0, 0, 1, 1], [], []>} : vector<16x128xf32>, vector<128x128xf32>, vector<16x128xf32> -> vector<16x128xf32>
    %c0_12 = arith.constant 0 : index
    %c0_13 = arith.constant 0 : index
    %10 = vector.load %arg7[%c0_12, %c0_13] : memref<1x128xf32, #tpu.memory_space<vmem>>, vector<1x128xf32>
    %11 = vector.broadcast %10 : vector<1x128xf32> to vector<16x128xf32>
    %12 = arith.addf %9, %11 : vector<16x128xf32>
    %c0_14 = arith.constant 0 : index
    %c0_15 = arith.constant 0 : index
    %13 = vector.load %arg8[%c0_14, %c0_15] : memref<128x128xf32, #tpu.memory_space<vmem>>, vector<128x128xf32>
    %cst_16 = arith.constant dense<0.000000e+00> : vector<16x128xf32>
    %14 = tpu.matmul %2, %13, %cst_16 {dimension_numbers = #tpu.dot_dimension_numbers<[1], [0], [0], [1], [0, 0, 1, 1], [], []>} : vector<16x128xf32>, vector<128x128xf32>, vector<16x128xf32> -> vector<16x128xf32>
    %c0_17 = arith.constant 0 : index
    %c0_18 = arith.constant 0 : index
    %15 = vector.load %arg9[%c0_17, %c0_18] : memref<1x128xf32, #tpu.memory_space<vmem>>, vector<1x128xf32>
    %16 = vector.broadcast %15 : vector<1x128xf32> to vector<16x128xf32>
    %17 = arith.addf %14, %16 : vector<16x128xf32>
    %18 = vector.extract_strided_slice %7 {offsets = [0, 0], sizes = [16, 32], strides = [1, 1]} : vector<16x128xf32> to vector<16x32xf32>
    %19 = vector.shape_cast %18 : vector<16x32xf32> to vector<2x8x32xf32>
    %20 = vector.extract_strided_slice %7 {offsets = [0, 32], sizes = [16, 32], strides = [1, 1]} : vector<16x128xf32> to vector<16x32xf32>
    %21 = vector.shape_cast %20 : vector<16x32xf32> to vector<2x8x32xf32>
    %22 = vector.extract_strided_slice %7 {offsets = [0, 64], sizes = [16, 32], strides = [1, 1]} : vector<16x128xf32> to vector<16x32xf32>
    %23 = vector.shape_cast %22 : vector<16x32xf32> to vector<2x8x32xf32>
    %24 = vector.extract_strided_slice %7 {offsets = [0, 96], sizes = [16, 32], strides = [1, 1]} : vector<16x128xf32> to vector<16x32xf32>
    %25 = vector.shape_cast %24 : vector<16x32xf32> to vector<2x8x32xf32>
    %26 = tpu.concatenate %19, %21, %23, %25 in 0 : vector<2x8x32xf32>, vector<2x8x32xf32>, vector<2x8x32xf32>, vector<2x8x32xf32> -> vector<8x8x32xf32>
    %27 = vector.extract_strided_slice %12 {offsets = [0, 0], sizes = [16, 32], strides = [1, 1]} : vector<16x128xf32> to vector<16x32xf32>
    %28 = vector.shape_cast %27 : vector<16x32xf32> to vector<2x8x32xf32>
    %29 = vector.extract_strided_slice %12 {offsets = [0, 32], sizes = [16, 32], strides = [1, 1]} : vector<16x128xf32> to vector<16x32xf32>
    %30 = vector.shape_cast %29 : vector<16x32xf32> to vector<2x8x32xf32>
    %31 = vector.extract_strided_slice %12 {offsets = [0, 64], sizes = [16, 32], strides = [1, 1]} : vector<16x128xf32> to vector<16x32xf32>
    %32 = vector.shape_cast %31 : vector<16x32xf32> to vector<2x8x32xf32>
    %33 = vector.extract_strided_slice %12 {offsets = [0, 96], sizes = [16, 32], strides = [1, 1]} : vector<16x128xf32> to vector<16x32xf32>
    %34 = vector.shape_cast %33 : vector<16x32xf32> to vector<2x8x32xf32>
    %35 = tpu.concatenate %28, %30, %32, %34 in 0 : vector<2x8x32xf32>, vector<2x8x32xf32>, vector<2x8x32xf32>, vector<2x8x32xf32> -> vector<8x8x32xf32>
    %36 = vector.extract_strided_slice %17 {offsets = [0, 0], sizes = [16, 32], strides = [1, 1]} : vector<16x128xf32> to vector<16x32xf32>
    %37 = vector.shape_cast %36 : vector<16x32xf32> to vector<2x8x32xf32>
    %38 = vector.extract_strided_slice %17 {offsets = [0, 32], sizes = [16, 32], strides = [1, 1]} : vector<16x128xf32> to vector<16x32xf32>
    %39 = vector.shape_cast %38 : vector<16x32xf32> to vector<2x8x32xf32>
    %40 = vector.extract_strided_slice %17 {offsets = [0, 64], sizes = [16, 32], strides = [1, 1]} : vector<16x128xf32> to vector<16x32xf32>
    %41 = vector.shape_cast %40 : vector<16x32xf32> to vector<2x8x32xf32>
    %42 = vector.extract_strided_slice %17 {offsets = [0, 96], sizes = [16, 32], strides = [1, 1]} : vector<16x128xf32> to vector<16x32xf32>
    %43 = vector.shape_cast %42 : vector<16x32xf32> to vector<2x8x32xf32>
    %44 = tpu.concatenate %37, %39, %41, %43 in 0 : vector<2x8x32xf32>, vector<2x8x32xf32>, vector<2x8x32xf32>, vector<2x8x32xf32> -> vector<8x8x32xf32>
    %cst_19 = arith.constant dense<0.000000e+00> : vector<8x8x8xf32>
    %45 = tpu.matmul %26, %35, %cst_19 {dimension_numbers = #tpu.dot_dimension_numbers<[2], [2], [1], [1], [0, 0, 0, 1, 1, 1], [0], [0]>} : vector<8x8x32xf32>, vector<8x8x32xf32>, vector<8x8x8xf32> -> vector<8x8x8xf32>
    %46 = tpu.iota {dimensions = array<i32: 1>} : vector<1x8x8xi32>
    %47 = tpu.iota {dimensions = array<i32: 2>} : vector<1x8x8xi32>
    %48 = arith.cmpi sle, %47, %46 : vector<1x8x8xi32>
    %cst_20 = arith.constant -1.000000e+30 : f32
    %49 = vector.shape_cast %48 : vector<1x8x8xi1> to vector<1x8x8xi1>
    %50 = vector.broadcast %49 : vector<1x8x8xi1> to vector<8x8x8xi1>
    %51 = vector.broadcast %cst_20 : f32 to vector<8x8x8xf32>
    %52 = arith.select %50, %45, %51 : vector<8x8x8xi1>, vector<8x8x8xf32>
    %cst_21 = arith.constant dense<0xFF800000> : vector<8x8xf32>
    %53 = vector.multi_reduction <maximumf>, %52, %cst_21 [2] : vector<8x8x8xf32> to vector<8x8xf32>
    %54 = vector.shape_cast %53 : vector<8x8xf32> to vector<8x8x1xf32>
    %55 = vector.broadcast %54 : vector<8x8x1xf32> to vector<8x8x8xf32>
    %56 = arith.subf %52, %55 : vector<8x8x8xf32>
    %57 = math.exp %56 : vector<8x8x8xf32>
    %cst_22 = arith.constant dense<0.000000e+00> : vector<8x8xf32>
    %58 = vector.multi_reduction <add>, %57, %cst_22 [2] : vector<8x8x8xf32> to vector<8x8xf32>
    %59 = vector.shape_cast %58 : vector<8x8xf32> to vector<8x8x1xf32>
    %60 = vector.broadcast %59 : vector<8x8x1xf32> to vector<8x8x8xf32>
    %61 = arith.divf %57, %60 : vector<8x8x8xf32>
    %cst_23 = arith.constant dense<0.000000e+00> : vector<8x8x32xf32>
    %62 = tpu.matmul %61, %44, %cst_23 {dimension_numbers = #tpu.dot_dimension_numbers<[2], [1], [1], [2], [0, 0, 0, 1, 1, 2], [0], [0]>} : vector<8x8x8xf32>, vector<8x8x32xf32>, vector<8x8x32xf32> -> vector<8x8x32xf32>
    %63 = vector.shape_cast %62 : vector<8x8x32xf32> to vector<4x16x32xf32>
    %64 = vector.extract_strided_slice %63 {offsets = [0, 0, 0], sizes = [1, 16, 32], strides = [1, 1, 1]} : vector<4x16x32xf32> to vector<1x16x32xf32>
    %65 = vector.shape_cast %64 : vector<1x16x32xf32> to vector<16x32xf32>
    %66 = vector.extract_strided_slice %63 {offsets = [1, 0, 0], sizes = [1, 16, 32], strides = [1, 1, 1]} : vector<4x16x32xf32> to vector<1x16x32xf32>
    %67 = vector.shape_cast %66 : vector<1x16x32xf32> to vector<16x32xf32>
    %68 = vector.extract_strided_slice %63 {offsets = [2, 0, 0], sizes = [1, 16, 32], strides = [1, 1, 1]} : vector<4x16x32xf32> to vector<1x16x32xf32>
    %69 = vector.shape_cast %68 : vector<1x16x32xf32> to vector<16x32xf32>
    %70 = vector.extract_strided_slice %63 {offsets = [3, 0, 0], sizes = [1, 16, 32], strides = [1, 1, 1]} : vector<4x16x32xf32> to vector<1x16x32xf32>
    %71 = vector.shape_cast %70 : vector<1x16x32xf32> to vector<16x32xf32>
    %72 = tpu.concatenate %65, %67, %69, %71 in 1 : vector<16x32xf32>, vector<16x32xf32>, vector<16x32xf32>, vector<16x32xf32> -> vector<16x128xf32>
    %c0_24 = arith.constant 0 : index
    %c0_25 = arith.constant 0 : index
    %73 = vector.load %arg10[%c0_24, %c0_25] : memref<128x128xf32, #tpu.memory_space<vmem>>, vector<128x128xf32>
    %cst_26 = arith.constant dense<0.000000e+00> : vector<16x128xf32>
    %74 = tpu.matmul %72, %73, %cst_26 {dimension_numbers = #tpu.dot_dimension_numbers<[1], [0], [0], [1], [0, 0, 1, 1], [], []>} : vector<16x128xf32>, vector<128x128xf32>, vector<16x128xf32> -> vector<16x128xf32>
    %c0_27 = arith.constant 0 : index
    %c0_28 = arith.constant 0 : index
    %75 = vector.load %arg11[%c0_27, %c0_28] : memref<1x128xf32, #tpu.memory_space<vmem>>, vector<1x128xf32>
    %76 = vector.broadcast %75 : vector<1x128xf32> to vector<16x128xf32>
    %77 = arith.addf %74, %76 : vector<16x128xf32>
    %c0_29 = arith.constant 0 : index
    %c0_30 = arith.constant 0 : index
    %78 = vector.load %arg12[%c0_29, %c0_30] : memref<16x128xf32, #tpu.memory_space<vmem>>, vector<16x128xf32>
    tpu.vector_store %arg12[%c0_29, %c0_30], %77 {strides = array<i32>} : memref<16x128xf32, #tpu.memory_space<vmem>>, vector<16x128xf32>,
    return
  }
  func.func @transform_0(%arg0: i32) -> (i32, i32) {
    %c0_i32 = arith.constant 0 : i32
    %c0_i32_0 = arith.constant 0 : i32
    return %arg0, %c0_i32 : i32, i32
  }
  func.func @transform_1(%arg0: i32) -> (i32, i32) {
    %c0_i32 = arith.constant 0 : i32
    %c0_i32_0 = arith.constant 0 : i32
    return %arg0, %c0_i32 : i32, i32
  }
  func.func @transform_2(%arg0: i32) -> (i32, i32) {
    %c0_i32 = arith.constant 0 : i32
    %c0_i32_0 = arith.constant 0 : i32
    return %arg0, %c0_i32 : i32, i32
  }
  func.func @transform_3(%arg0: i32) -> (i32, i32) {
    %c0_i32 = arith.constant 0 : i32
    %c0_i32_0 = arith.constant 0 : i32
    %c0_i32_1 = arith.constant 0 : i32
    return %c0_i32, %c0_i32_0 : i32, i32
  }
  func.func @transform_4(%arg0: i32) -> (i32, i32) {
    %c0_i32 = arith.constant 0 : i32
    %c0_i32_0 = arith.constant 0 : i32
    %c0_i32_1 = arith.constant 0 : i32
    return %c0_i32, %c0_i32_0 : i32, i32
  }
  func.func @transform_5(%arg0: i32) -> (i32, i32) {
    %c0_i32 = arith.constant 0 : i32
    %c0_i32_0 = arith.constant 0 : i32
    %c0_i32_1 = arith.constant 0 : i32
    return %c0_i32, %c0_i32_0 : i32, i32
  }
  func.func @transform_6(%arg0: i32) -> (i32, i32) {
    %c0_i32 = arith.constant 0 : i32
    %c0_i32_0 = arith.constant 0 : i32
    %c0_i32_1 = arith.constant 0 : i32
    return %c0_i32, %c0_i32_0 : i32, i32
  }
  func.func @transform_7(%arg0: i32) -> (i32, i32) {
    %c0_i32 = arith.constant 0 : i32
    %c0_i32_0 = arith.constant 0 : i32
    %c0_i32_1 = arith.constant 0 : i32
    return %c0_i32, %c0_i32_0 : i32, i32
  }
  func.func @transform_8(%arg0: i32) -> (i32, i32) {
    %c0_i32 = arith.constant 0 : i32
    %c0_i32_0 = arith.constant 0 : i32
    %c0_i32_1 = arith.constant 0 : i32
    return %c0_i32, %c0_i32_0 : i32, i32
  }
  func.func @transform_9(%arg0: i32) -> (i32, i32) {
    %c0_i32 = arith.constant 0 : i32
    %c0_i32_0 = arith.constant 0 : i32
    %c0_i32_1 = arith.constant 0 : i32
    return %c0_i32, %c0_i32_0 : i32, i32
  }
  func.func @transform_10(%arg0: i32) -> (i32, i32) {
    %c0_i32 = arith.constant 0 : i32
    %c0_i32_0 = arith.constant 0 : i32
    %c0_i32_1 = arith.constant 0 : i32
    return %c0_i32, %c0_i32_0 : i32, i32
  }
  func.func @transform_11(%arg0: i32) -> (i32, i32) {
    %c0_i32 = arith.constant 0 : i32
    %c0_i32_0 = arith.constant 0 : i32
    return %arg0, %c0_i32 : i32, i32
  }
}

</mosaic_0001>

<bundles_post_ra>
// kernel: multi_head_attention.1
= control target key start
LH: loop header
LB: loop body
LE: loop exit
PB: predicated region body
PF: predicated region fallthrough
CT: control target
= control target key end

     0   :  { %s1516_s17 = smov 0   ;;  %s1944_s0 = inlined_call_operand.vmem [shape: f32[32,128], index: 0, kind: input, shape index: {}]   ;;  %s1945_s1 = inlined_call_operand.vmem [shape: f32[32,128], index: 1, kind: input, shape index: {}]   ;;  %s1946_s2 = inlined_call_operand.vmem [shape: f32[32,128], index: 2, kind: input, shape index: {}]   ;;  %s1947_s3 = inlined_call_operand.vmem [shape: f32[128,128], index: 3, kind: input, shape index: {}]   ;;  %s1948_s4 = inlined_call_operand.vmem [shape: f32[1,128], index: 4, kind: input, shape index: {}]   ;;  %s1949_s5 = inlined_call_operand.vmem [shape: f32[128,128], index: 5, kind: input, shape index: {}]   ;;  %s1950_s6 = inlined_call_operand.vmem [shape: f32[1,128], index: 6, kind: input, shape index: {}]   ;;  %s1951_s7 = inlined_call_operand.vmem [shape: f32[128,128], index: 7, kind: input, shape index: {}]   ;;  %s1952_s8 = inlined_call_operand.vmem [shape: f32[1,128], index: 8, kind: input, shape index: {}]   ;;  %s1953_s9 = inlined_call_operand.vmem [shape: f32[128,128], index: 9, kind: input, shape index: {}]   ;;  %s1954_s10 = inlined_call_operand.vmem [shape: f32[1,128], index: 10, kind: input, shape index: {}]   ;;  %s1955_s11 = inlined_call_operand.vmem [shape: f32[32,128], index: 11, kind: output, shape index: {}]  }
   0x1 LB: > { %s1359_s18 = sadd.s32 4294967295, %s1451_s17   ;;  %p1363_p0 = scmp.ge.s32.totalorder %s1451_s17, 1  ;;  %s1451_s17 = sphi %s1516_s17, %s21_s17  }
   0x2   : > { %p360_p1 = scmp.lt.s32.totalorder %s1451_s17, 3 }
   0x4   : > { %p361_p2 = pnand %p1363_p0, %p360_p1 }
   0x5   : > { %s1364_s15 = sshll.u32 (!%p361_p2), %s1359_s18, 1  ;;  %s1453_s26 = smov (!%p361_p2), 64  }
   0x6   : > { %364 = sbr.rel (%p361_p2) target bundleno = 1113 (0x459), region = 64  ;;  %p411_p3 = scmp.lt.s32.totalorder (!%p361_p2), %s1364_s15, 3 }
   0x7   : > { %s1454_s27 = smov (!%p361_p2), 96   ;;  %s1455_s28 = smov (!%p361_p2), 32  }
   0xb   : > { %v498_v0 = vld [vmem:[%s1949_s5 + $0x78] sm:$0xff]  ;;  %v497_v1 = vld [vmem:[%s1949_s5 + $0x70] sm:$0xff]  ;;  %v496_v4 = vld [vmem:[%s1949_s5 + $0x68] sm:$0xff]  ;;  %s1965_s15 = smov (!%p411_p3, %s1364_s15), 3  ;;  %vm617_vm0 = vcmask 261120   ;;  %v810_v57 = vlaneseq  ;;  %vm825_vm2 = vcmask 64512  }
   0xc   : > { %v455_v2 = vld [vmem:[%s1947_s3 + $0x78] sm:$0xff]  ;;  %503 = vmatpush.msra.mxu1 %v498_v0  ;;  %v454_v3 = vld [vmem:[%s1947_s3 + $0x70] sm:$0xff]  ;;  %v453_v5 = vld [vmem:[%s1947_s3 + $0x68] sm:$0xff]  ;;  %s1604_s21 = sshll.u32 %s1965_s15, 3 }
   0xd   : > { %460 = vmatpush.msra.mxu0 %v455_v2  ;;  %v495_v6 = vld [vmem:[%s1949_s5 + $0x60] sm:$0xff]  ;;  %v494_v8 = vld [vmem:[%s1949_s5 + $0x58] sm:$0xff]  ;;  %v493_v10 = vld [vmem:[%s1949_s5 + $0x50] sm:$0xff]  ;;  %s420_s30 = scalar_lea.vmem %s1945_s1, %s1604_s21  ;;  %s414_s14 = scalar_lea.vmem %s1944_s0, %s1604_s21  ;;  %v811_v60 = vshrl.u32 %v810_v57, 7  ;;  %v813_v61 = vand.u32 127, %v810_v57 }
   0xe   : > { %504 = vmatpush.msra.mxu1 %v497_v1  ;;  %v452_v7 = vld [vmem:[%s1947_s3 + $0x60] sm:$0xff]  ;;  %v451_v9 = vld [vmem:[%s1947_s3 + $0x58] sm:$0xff]  ;;  %v450_v11 = vld [vmem:[%s1947_s3 + $0x50] sm:$0xff]  ;;  %s426_s13 = scalar_lea.vmem %s1946_s2, %s1604_s21  ;;  %s432_s24 = scalar_lea.vmem %s1955_s11, %s1604_s21 }
   0xf   : > { %461 = vmatpush.msra.mxu0 %v454_v3  ;;  %v492_v12 = vld [vmem:[%s1949_s5 + $0x48] sm:$0xff]  ;;  %v491_v14 = vld [vmem:[%s1949_s5 + $0x40] sm:$0xff]  ;;  %v490_v16 = vld [vmem:[%s1949_s5 + $0x38] sm:$0xff]  ;;  %vm1688_vm1 = vcmp.le.s32.totalorder %v813_v61, %v811_v60 }
  0x10   : > { %505 = vmatpush.msra.mxu1 %v496_v4  ;;  %v449_v13 = vld [vmem:[%s1947_s3 + $0x48] sm:$0xff]  ;;  %v448_v15 = vld [vmem:[%s1947_s3 + $0x40] sm:$0xff]  ;;  %v447_v17 = vld [vmem:[%s1947_s3 + $0x38] sm:$0xff] }
  0x11   : > { %462 = vmatpush.msra.mxu0 %v453_v5  ;;  %v489_v18 = vld [vmem:[%s1949_s5 + $0x30] sm:$0xff]  ;;  %v488_v20 = vld [vmem:[%s1949_s5 + $0x28] sm:$0xff]  ;;  %v487_v22 = vld [vmem:[%s1949_s5 + $0x20] sm:$0xff] }
  0x12   : > { %506 = vmatpush.msra.mxu1 %v495_v6  ;;  %v446_v19 = vld [vmem:[%s1947_s3 + $0x30] sm:$0xff]  ;;  %v445_v21 = vld [vmem:[%s1947_s3 + $0x28] sm:$0xff]  ;;  %v444_v23 = vld [vmem:[%s1947_s3 + $0x20] sm:$0xff] }
  0x13   : > { %463 = vmatpush.msra.mxu0 %v452_v7  ;;  %v486_v24 = vld [vmem:[%s1949_s5 + $0x18] sm:$0xff]  ;;  %v485_v26 = vld [vmem:[%s1949_s5 + $0x10] sm:$0xff]  ;;  %v484_v28 = vld [vmem:[%s1949_s5 + $0x8] sm:$0xff] }
  0x14   : > { %507 = vmatpush.msra.mxu1 %v494_v8  ;;  %v443_v25 = vld [vmem:[%s1947_s3 + $0x18] sm:$0xff]  ;;  %v442_v27 = vld [vmem:[%s1947_s3 + $0x10] sm:$0xff]  ;;  %v441_v29 = vld [vmem:[%s1947_s3 + $0x8] sm:$0xff] }
  0x15   : > { %464 = vmatpush.msra.mxu0 %v451_v9  ;;  %v483_v30 = vld [vmem:[%s1949_s5] sm:$0xff]  ;;  %v437_v34 = vld [vmem:[%s420_s30 + $0x8] sm:$0xff]  ;;  %v541_v50 = vld [vmem:[%s1951_s7 + $0x78] sm:$0xff] }
  0x16   : > { %508 = vmatpush.msra.mxu1 %v493_v10  ;;  %v440_v31 = vld [vmem:[%s1947_s3] sm:$0xff]  ;;  %v435_v35 = vld [vmem:[%s414_s14 + $0x8] sm:$0xff]  ;;  %v540_v51 = vld [vmem:[%s1951_s7 + $0x70] sm:$0xff]  ;;  %546 = vmatpush.msra.mxu2 %v541_v50 }
  0x17   : > { %465 = vmatpush.msra.mxu0 %v450_v11  ;;  %v436_v32 = vld [vmem:[%s420_s30] sm:$0xff]  ;;  %v539_v52 = vld [vmem:[%s1951_s7 + $0x68] sm:$0xff]  ;;  %v537_v56 = vld [vmem:[%s1951_s7 + $0x58] sm:$0xff] }
  0x18   : > { %509 = vmatpush.msra.mxu1 %v492_v12  ;;  %v434_v33 = vld [vmem:[%s414_s14] sm:$0xff]  ;;  %547 = vmatpush.msra.mxu2 %v540_v51  ;;  %v536_v58 = vld [vmem:[%s1951_s7 + $0x50] sm:$0xff]  ;;  %v535_v59 = vld [vmem:[%s1951_s7 + $0x48] sm:$0xff] }
  0x19   : > { %466 = vmatpush.msra.mxu0 %v449_v13  ;;  %v1409_v36 = vld [vmem:[%s1950_s6] ss:$0 sm:$0xff]  ;;  %v533_v1 = vld [vmem:[%s1951_s7 + $0x38] sm:$0xff]  ;;  %v532_v3 = vld [vmem:[%s1951_s7 + $0x30] sm:$0xff] }
  0x1a   : > { %510 = vmatpush.msra.mxu1 %v491_v14  ;;  %v1410_v37 = vld [vmem:[%s1948_s4] ss:$0 sm:$0xff]  ;;  %548 = vmatpush.msra.mxu2 %v539_v52  ;;  %v531_v6 = vld [vmem:[%s1951_s7 + $0x28] sm:$0xff]  ;;  %v529_v11 = vld [vmem:[%s1951_s7 + $0x18] sm:$0xff] }
  0x1b   : > { %467 = vmatpush.msra.mxu0 %v448_v15  ;;  %v538_v54 = vld [vmem:[%s1951_s7 + $0x60] sm:$0xff]  ;;  %v528_v12 = vld [vmem:[%s1951_s7 + $0x10] sm:$0xff]  ;;  %v527_v15 = vld [vmem:[%s1951_s7 + $0x8] sm:$0xff] }
  0x1c   : > { %511 = vmatpush.msra.mxu1 %v490_v16  ;;  %549 = vmatpush.msra.mxu2 %v538_v54  ;;  %v534_v63 = vld [vmem:[%s1951_s7 + $0x40] sm:$0xff] }
  0x1d   : > { %468 = vmatpush.msra.mxu0 %v447_v17  ;;  %v530_v9 = vld [vmem:[%s1951_s7 + $0x20] sm:$0xff] }
  0x1e   : > { %512 = vmatpush.msra.mxu1 %v489_v18  ;;  %550 = vmatpush.msra.mxu2 %v537_v56  ;;  %v526_v18 = vld [vmem:[%s1951_s7] sm:$0xff] }
  0x1f   : > { %469 = vmatpush.msra.mxu0 %v446_v19  ;;  %v438_v19 = vld [vmem:[%s426_s13] sm:$0xff] }
  0x20   : > { %513 = vmatpush.msra.mxu1 %v488_v20  ;;  %551 = vmatpush.msra.mxu2 %v536_v58 }
  0x21   : > { %470 = vmatpush.msra.mxu0 %v445_v21  ;;  %v439_v21 = vld [vmem:[%s426_s13 + $0x8] sm:$0xff] }
  0x22   : > { %514 = vmatpush.msra.mxu1 %v487_v22  ;;  %552 = vmatpush.msra.mxu2 %v535_v59 }
  0x23   : > { %471 = vmatpush.msra.mxu0 %v444_v23 }
  0x24   : > { %515 = vmatpush.msra.mxu1 %v486_v24  ;;  %553 = vmatpush.msra.mxu2 %v534_v63 }
  0x25   : > { %472 = vmatpush.msra.mxu0 %v443_v25 }
  0x26   : > { %516 = vmatpush.msra.mxu1 %v485_v26  ;;  %554 = vmatpush.msra.mxu2 %v533_v1 }
  0x27   : > { %473 = vmatpush.msra.mxu0 %v442_v27 }
  0x28   : > { %517 = vmatpush.msra.mxu1 %v484_v28  ;;  %555 = vmatpush.msra.mxu2 %v532_v3 }
  0x29   : > { %474 = vmatpush.msra.mxu0 %v441_v29 }
  0x2a   : > { %518 = vmatpush.msra.mxu1 %v483_v30  ;;  %556 = vmatpush.msra.mxu2 %v531_v6 }
  0x2b   : > { %475 = vmatpush.msra.mxu0 %v440_v31  ;;  %519 = vmatmul.f32.vlgmr.msra.gmra.mxu1 %v436_v32 }
  0x2c   : > { %476 = vmatmul.f32.vlgmr.msra.gmra.mxu0 %v434_v33  ;;  %557 = vmatpush.msra.mxu2 %v530_v9 }
  0x2e   : > { %558 = vmatpush.msra.mxu2 %v529_v11 }
  0x30   : > { %559 = vmatpush.msra.mxu2 %v528_v12 }
  0x32   : > { %560 = vmatpush.msra.mxu2 %v527_v15 }
  0x33   : > { %522 = vmatmul.f32.gmra.mxu1 %v437_v34 }
  0x34   : > { %479 = vmatmul.f32.gmra.mxu0 %v435_v35  ;;  %561 = vmatpush.msra.mxu2 %v526_v18 }
  0x35   : > { %562 = vmatmul.f32.vlgmr.msra.gmra.mxu2 %v438_v19 }
  0x3d   : > { %565 = vmatmul.f32.gmra.mxu2 %v439_v21 }
  0xa8   : > { %v520_v38 = vpop.f32.mrf.mxu1 }
  0xa9   : > { %v477_v39 = vpop.f32.mrf.mxu0  ;;  %v521_v40 = vadd.f32 %v1409_v36, %v520_v38 }
  0xaa   : > { %v478_v41 = vadd.f32 %v1410_v37, %v477_v39 }
  0xab   : > { %589 = vrot.lane.b32.xlu2 %v521_v40, %s1453_s26  ;;  %585 = vrot.lane.b32.xlu0 %v521_v40, %s1454_s27 }
  0xac   : > { %1372 = vmatpush.xpose.msk.msra.mxu3 %vm617_vm0, %v521_v40 }
  0xaf   : > { %1373 = vmatmul.msk.f32.vlgmr.msra.gmra.mxu3 %vm617_vm0, %v478_v41 }
  0xb0   : > { %v523_v42 = vpop.f32.mrf.mxu1 }
  0xb1   : > { %v480_v43 = vpop.f32.mrf.mxu0  ;;  %v524_v44 = vadd.f32 %v1409_v36, %v523_v42 }
  0xb2   : > { %v481_v45 = vadd.f32 %v1410_v37, %v480_v43 }
  0xb3   : > { %587 = vrot.lane.b32.xlu1 %v524_v44, %s1454_s27  ;;  %1374 = vmatpush.xpose.msk.msrb.mxu3 %vm617_vm0, %v524_v44 }
  0xb4   : > { %575 = vrot.lane.b32.xlu2 %v478_v41, %s1453_s26  ;;  %571 = vrot.lane.b32.xlu0 %v478_v41, %s1454_s27 }
  0xb7   : > { %1375 = vmatmul.msk.f32.vlgmr.msrb.gmra.mxu3 %vm617_vm0, %v481_v45 }
  0xbb   : > { %573 = vrot.lane.b32.xlu1 %v481_v45, %s1454_s27 }
  0xbc   : > { %593 = vrot.lane.b32.xlu2 %v521_v40, %s1455_s28  ;;  %591 = vrot.lane.b32.xlu0 %v524_v44, %s1453_s26 }
  0xc3   : > { %577 = vrot.lane.b32.xlu1 %v481_v45, %s1453_s26 }
  0xc4   : > { %581 = vrot.lane.b32.xlu2 %v481_v45, %s1455_s28  ;;  %579 = vrot.lane.b32.xlu0 %v478_v41, %s1455_s28  ;;  %v1411_v45 = vld [vmem:[%s1952_s8] ss:$0 sm:$0xff] }
  0xcb   : > { %595 = vrot.lane.b32.xlu1 %v524_v44, %s1455_s28 }
 0x105   : > { %v590_v46 = vpop.permute.xlu2 %589 }
 0x10e   : > { %v576_v47 = vpop.permute.xlu2 %575 }
 0x116   : > { %v594_v48 = vpop.permute.xlu2 %593 }
 0x117   : > { %1384 = vmatpush.xpose.msk.msrb.mxu0 %vm617_vm0, %v594_v48 }
 0x11d   : > { %v586_v49 = vpop.permute.xlu0 %585 }
 0x11e   : > { %1376 = vmatpush.xpose.msk.msra.mxu3 %vm617_vm0, %v586_v49  ;;  %v582_v20 = vpop.permute.xlu2 %581  ;;  %v563_v49 = vpop.f32.mrf.mxu2 }
 0x11f   : > { %v1761_v51 = vadd.f32 %v1411_v45, %v563_v49 }
 0x125   : > { %v588_v53 = vpop.permute.xlu1 %587 }
 0x126   : > { %v572_v55 = vpop.permute.xlu0 %571  ;;  %1378 = vmatpush.xpose.msk.msrb.mxu3 %vm617_vm0, %v588_v53  ;;  %v566_v53 = vpop.f32.mrf.mxu2 }
 0x127   : > { %1377 = vmatmul.msk.f32.vlgmr.msra.gmra.mxu3 %vm617_vm0, %v572_v55  ;;  %v1766_v54 = vadd.f32 %v1411_v45, %v566_v53 }
 0x12a   : > { %1380 = vmatpush.xpose.msk.msra.mxu3 %vm617_vm0, %v590_v46 }
 0x12d   : > { %v574_v62 = vpop.permute.xlu1 %573 }
 0x12e   : > { %v592_v0 = vpop.permute.xlu0 %591 }
 0x12f   : > { %1379 = vmatmul.msk.f32.vlgmr.msrb.gmra.mxu3 %vm617_vm0, %v574_v62 }
 0x130   : > { %1382 = vmatpush.xpose.msk.msrb.mxu3 %vm617_vm0, %v592_v0 }
 0x132   : > { %v639_v4 = vpop.f32.mrf.mxu3 }
 0x133   : > { %v817_v5 = vsel %vm1688_vm1, %v639_v4, -1e+30 }
 0x134   : > { %v826_v7 = vsel %vm825_vm2, %v817_v5, -inf }
 0x135   : > { %827 = vmax.xlane.f32.xlu1 %v826_v7  ;;  %v578_v8 = vpop.permute.xlu1 %577 }
 0x136   : > { %v580_v10 = vpop.permute.xlu0 %579 }
 0x137   : > { %1381 = vmatmul.msk.f32.vlgmr.msra.gmra.mxu3 %vm617_vm0, %v576_v47  ;;  %1385 = vmatmul.msk.f32.vlgmr.msrb.gmra.mxu0 %vm617_vm0, %v580_v10 }
 0x138   : > { %1036 = vmatpush.msra.mxu3 %v1761_v51 }
 0x13a   : > { %v663_v13 = vpop.f32.mrf.mxu3 }
 0x13b   : > { %v818_v14 = vsel %vm1688_vm1, %v663_v13, -1e+30 }
 0x13c   : > { %v829_v16 = vsel %vm825_vm2, %v818_v14, -inf }
 0x13d   : > { %830 = vmax.xlane.f32.xlu2 %v829_v16  ;;  %v596_v17 = vpop.permute.xlu1 %595 }
 0x13e   : > { %1386 = vmatpush.xpose.msk.msrb.mxu1 %vm617_vm0, %v596_v17 }
 0x13f   : > { %1383 = vmatmul.msk.f32.vlgmr.msrb.gmra.mxu3 %vm617_vm0, %v578_v8 }
 0x140   : > { %1059 = vmatpush.msrb.mxu3 %v1766_v54 }
 0x141   : > { %1387 = vmatmul.msk.f32.vlgmr.msrb.gmra.mxu1 %vm617_vm0, %v582_v20 }
 0x1a8   : > { %v828_v22 = vpop.xlane.xlu1 %827 }
 0x1a9   : > { %v850_v23 = vsub.f32 %v817_v5, %v828_v22 }
 0x1aa   : > { %v687_v24 = vpop.f32.mrf.mxu3 }
 0x1ab   : > { %v858_v25 = vmul.f32 1.442695, %v850_v23  ;;  %v819_v26 = vsel %vm1688_vm1, %v687_v24, -1e+30 }
 0x1ac   : > { %v832_v27 = vsel %vm825_vm2, %v819_v26, -inf }
 0x1ad   : > { %1413 = vpow2.f32 %v858_v25  ;;  %833 = vmax.xlane.f32.xlu0 %v832_v27 }
 0x1b0   : > { %v831_v28 = vpop.xlane.xlu2 %830 }
 0x1b1   : > { %v851_v29 = vsub.f32 %v818_v14, %v831_v28 }
 0x1b2   : > { %v711_v30 = vpop.f32.mrf.mxu3 }
 0x1b3   : > { %v1731_v31 = vpop.eup %1413  ;;  %v860_v32 = vmul.f32 1.442695, %v851_v29  ;;  %v1759_v50 = vsel %vm1688_vm1, %v711_v30, -1e+30 }
 0x1b4   : > { %v783_v33 = vpop.f32.mrf.mxu0  ;;  %v874_v34 = vsel %vm825_vm2, %v1731_v31, 0.0  ;;  %v835_v52 = vsel %vm825_vm2, %v1759_v50, -inf }
 0x1b5   : > { %1415 = vpow2.f32 %v860_v32  ;;  %v823_v35 = vsel %vm1688_vm1, %v783_v33, -1e+30  ;;  %875 = vadd.xlane.f32.xlu2 %v874_v34 }
 0x1b6   : > { %v844_v36 = vsel %vm825_vm2, %v823_v35, -inf }
 0x1b7   : > { %845 = vmax.xlane.f32.xlu1 %v844_v36 }
 0x1ba   : > { %v735_v37 = vpop.f32.mrf.mxu3 }
 0x1bb   : > { %v1738_v38 = vpop.eup %1415  ;;  %v1742_v39 = vsel %vm1688_vm1, %v735_v37, -1e+30 }
 0x1bc   : > { %v838_v40 = vsel %vm825_vm2, %v1742_v39, -inf  ;;  %v877_v42 = vsel %vm825_vm2, %v1738_v38, 0.0 }
 0x1bd   : > { %839 = vmax.xlane.f32.xlu2 %v838_v40 }
 0x1be   : > { %v807_v41 = vpop.f32.mrf.mxu1 }
 0x1bf   : > { %v824_v43 = vsel %vm1688_vm1, %v807_v41, -1e+30  ;;  %878 = vadd.xlane.f32.xlu1 %v877_v42 }
 0x1c0   : > { %v847_v44 = vsel %vm825_vm2, %v824_v43, -inf }
 0x1c1   : > { %848 = vmax.xlane.f32.xlu0 %v847_v44 }
 0x1c2   : > { %v759_v46 = vpop.f32.mrf.mxu3 }
 0x1c3   : > { %v822_v47 = vsel %vm1688_vm1, %v759_v46, -1e+30 }
 0x1c4   : > { %v841_v48 = vsel %vm825_vm2, %v822_v47, -inf }
 0x1c5   : > { %842 = vmax.xlane.f32.xlu2 %v841_v48 }
 0x1c9   : > { %836 = vmax.xlane.f32.xlu0 %v835_v52 }
 0x1d8   : > { %605 = vrot.lane.b32.xlu1 %v1761_v51, %s1453_s26 }
 0x1dd   : > { %601 = vrot.lane.b32.xlu0 %v1766_v54, %s1454_s27  ;;  %599 = vrot.lane.b32.xlu2 %v1761_v51, %s1454_s27 }
 0x220   : > { %v834_v55 = vpop.xlane.xlu0 %833 }
 0x221   : > { %v852_v56 = vsub.f32 %v819_v26, %v834_v55 }
 0x223   : > { %v862_v57 = vmul.f32 1.442695, %v852_v56 }
 0x225   : > { %1417 = vpow2.f32 %v862_v57 }
 0x228   : > { %v876_v58 = vpop.xlane.xlu2 %875 }
 0x229   : > { %1419 = vrcp.f32 %v876_v58  ;;  %v909_v5 = vand.u32 2147483648, %v876_v58  ;;  %v907_v7 = vand.u32 2147483647, %v876_v58  ;;  %vm903_vm4 = vweird.f32 %v876_v58 }
 0x22a   : > { %v846_v59 = vpop.xlane.xlu1 %845 }
 0x22b   : > { %v1775_v60 = vpop.eup %1417  ;;  %v856_v61 = vsub.f32 %v823_v35, %v846_v59  ;;  %v910_v13 = vor.u32 1.1754944e-38, %v909_v5  ;;  %vm908_vm6 = vcmp.eq.f32.partialorder %v907_v7, 8.507059e+37 }
 0x22c   : > { %v880_v62 = vsel %vm825_vm2, %v1775_v60, 0.0 }
 0x22d   : > { %v870_v63 = vmul.f32 1.442695, %v856_v61  ;;  %881 = vadd.xlane.f32.xlu1 %v880_v62 }
 0x22f   : > { %v1420_v0 = vpop.eup %1419  ;;  %1421 = vpow2.f32 %v870_v63 }
 0x230   : > { %v899_v1 = vmul.f32 %v1420_v0, %v876_v58  ;;  %v840_v2 = vpop.xlane.xlu2 %839  ;;  %vm904_vm3 = vweird.f32 %v1420_v0 }
 0x231   : > { %vm905_vm5 = vmor %vm903_vm4, %vm904_vm3  ;;  %v854_v14 = vsub.f32 %v1742_v39, %v840_v2 }
 0x232   : > { %v900_v3 = vsub.f32 1.0, %v899_v1  ;;  %v879_v4 = vpop.xlane.xlu1 %878 }
 0x233   : > { %1423 = vrcp.f32 %v879_v4  ;;  %v866_v23 = vmul.f32 1.442695, %v854_v14  ;;  %v924_v27 = vand.u32 2147483648, %v879_v4  ;;  %v922_v30 = vand.u32 2147483647, %v879_v4 }
 0x234   : > { %v901_v6 = vmul.f32 %v1420_v0, %v900_v3  ;;  %v849_v8 = vpop.xlane.xlu0 %848  ;;  %vm918_vm8 = vweird.f32 %v879_v4 }
 0x235   : > { %v1779_v9 = vpop.eup %1421  ;;  %v857_v10 = vsub.f32 %v824_v43, %v849_v8  ;;  %v925_v35 = vor.u32 1.1754944e-38, %v924_v27  ;;  %vm923_vm10 = vcmp.eq.f32.partialorder %v922_v30, 8.507059e+37 }
 0x236   : > { %v902_v11 = vadd.f32 %v1420_v0, %v901_v6  ;;  %v892_v12 = vsel %vm825_vm2, %v1779_v9, 0.0 }
 0x237   : > { %v872_v15 = vmul.f32 1.442695, %v857_v10  ;;  %893 = vadd.xlane.f32.xlu0 %v892_v12 }
 0x238   : > { %v906_v16 = vsel %vm905_vm5, %v1420_v0, %v902_v11  ;;  %v843_v17 = vpop.xlane.xlu2 %842 }
 0x239   : > { %v1424_v18 = vpop.eup %1423  ;;  %v911_v19 = vsel %vm908_vm6, %v910_v13, %v906_v16  ;;  %1425 = vpow2.f32 %v872_v15  ;;  %v855_v20 = vsub.f32 %v822_v47, %v843_v17 }
 0x23a   : > { %v914_v21 = vmul.f32 %v1424_v18, %v879_v4  ;;  %v912_v22 = vmul.f32 %v1731_v31, %v911_v19  ;;  %vm919_vm7 = vweird.f32 %v1424_v18 }
 0x23b   : > { %v868_v24 = vmul.f32 1.442695, %v855_v20  ;;  %vm920_vm9 = vmor %vm918_vm8, %vm919_vm7 }
 0x23c   : > { %v915_v25 = vsub.f32 1.0, %v914_v21  ;;  %1388 = vmatmul.msk.f32.vlgmr.msra.gmra.mxu3 %vm825_vm2, %v912_v22  ;;  %v837_v26 = vpop.xlane.xlu0 %836 }
 0x23d   : > { %1427 = vpow2.f32 %v868_v24  ;;  %v853_v28 = vsub.f32 %v1759_v50, %v837_v26 }
 0x23e   : > { %v916_v29 = vmul.f32 %v1424_v18, %v915_v25  ;;  %1429 = vpow2.f32 %v866_v23 }
 0x23f   : > { %v1787_v32 = vpop.eup %1425  ;;  %v864_v33 = vmul.f32 1.442695, %v853_v28 }
 0x240   : > { %v917_v34 = vadd.f32 %v1424_v18, %v916_v29  ;;  %v895_v31 = vsel %vm825_vm2, %v1787_v32, 0.0  ;;  %v600_v36 = vpop.permute.xlu2 %599 }
 0x241   : > { %1431 = vpow2.f32 %v864_v33  ;;  %896 = vadd.xlane.f32.xlu0 %v895_v31  ;;  %1082 = vmatpush.msra.mxu0 %v600_v36 }
 0x242   : > { %v921_v37 = vsel %vm920_vm9, %v1424_v18, %v917_v34 }
 0x243   : > { %v1791_v39 = vpop.eup %1427  ;;  %v926_v40 = vsel %vm923_vm10, %v925_v35, %v921_v37 }
 0x244   : > { %v889_v41 = vsel %vm825_vm2, %v1791_v39, 0.0  ;;  %v927_v42 = vmul.f32 %v1738_v38, %v926_v40  ;;  %v1796_v43 = vpop.eup %1429 }
 0x245   : > { %890 = vadd.xlane.f32.xlu1 %v889_v41  ;;  %v886_v45 = vsel %vm825_vm2, %v1796_v43, 0.0 }
 0x246   : > { %1389 = vmatmul.msk.f32.vlgmr.msrb.gmra.mxu3 %vm825_vm2, %v927_v42 }
 0x247   : > { %v1799_v44 = vpop.eup %1431 }
 0x248   : > { %v883_v46 = vsel %vm825_vm2, %v1799_v44, 0.0 }
 0x249   : > { %887 = vadd.xlane.f32.xlu0 %v886_v45  ;;  %884 = vadd.xlane.f32.xlu2 %v883_v46 }
 0x24a   : > { %v606_v47 = vpop.permute.xlu1 %605 }
 0x24b   : > { %1128 = vmatpush.msrb.mxu0 %v606_v47 }
 0x24f   : > { %v602_v48 = vpop.permute.xlu0 %601 }
 0x250   : > { %1105 = vmatpush.msra.mxu1 %v602_v48 }
 0x25d   : > { %613 = vrot.lane.b32.xlu0 %v1766_v54, %s1455_s28 }
 0x25e   : > { %607 = vrot.lane.b32.xlu1 %v1766_v54, %s1453_s26 }
 0x261   : > { %611 = vrot.lane.b32.xlu2 %v1761_v51, %s1455_s28 }
 0x2a0   : > { %v882_v38 = vpop.xlane.xlu1 %881 }
 0x2a1   : > { %1433 = vrcp.f32 %v882_v38  ;;  %v939_v53 = vand.u32 2147483648, %v882_v38  ;;  %v937_v56 = vand.u32 2147483647, %v882_v38  ;;  %vm933_vm12 = vweird.f32 %v882_v38 }
 0x2a3   : > { %v940_v59 = vor.u32 1.1754944e-38, %v939_v53  ;;  %vm938_vm14 = vcmp.eq.f32.partialorder %v937_v56, 8.507059e+37 }
 0x2a7   : > { %v1434_v49 = vpop.eup %1433 }
 0x2a8   : > { %v929_v50 = vmul.f32 %v1434_v49, %v882_v38  ;;  %vm934_vm11 = vweird.f32 %v1434_v49 }
 0x2a9   : > { %vm935_vm13 = vmor %vm933_vm12, %vm934_vm11 }
 0x2aa   : > { %v930_v52 = vsub.f32 1.0, %v929_v50  ;;  %v1811_v57 = vpop.xlane.xlu0 %893 }
 0x2ab   : > { %1435 = vrcp.f32 %v1811_v57  ;;  %v999_v13 = vand.u32 2147483648, %v1811_v57  ;;  %vm993_vm1 = vweird.f32 %v1811_v57 }
 0x2ac   : > { %v931_v55 = vmul.f32 %v1434_v49, %v930_v52 }
 0x2ae   : > { %v932_v58 = vadd.f32 %v1434_v49, %v931_v55 }
 0x2b0   : > { %v936_v61 = vsel %vm935_vm13, %v1434_v49, %v932_v58  ;;  %v997_v49 = vand.u32 2147483647, %v1811_v57 }
 0x2b1   : > { %v941_v51 = vsel %vm938_vm14, %v940_v59, %v936_v61  ;;  %v1818_v63 = vpop.eup %1435 }
 0x2b2   : > { %v942_v54 = vmul.f32 %v1775_v60, %v941_v51  ;;  %v989_v1 = vmul.f32 %v1818_v63, %v1811_v57  ;;  %vm994_vm15 = vweird.f32 %v1818_v63  ;;  %v1000_v51 = vor.u32 1.1754944e-38, %v999_v13  ;;  %v1243_v13 = vld [vmem:[%s1953_s9 + $0x48] sm:$0xff] }
 0x2b4   : > { %1390 = vmatmul.msk.f32.vlgmr.msra.gmra.mxu0 %vm825_vm2, %v942_v54  ;;  %v1816_v62 = vpop.xlane.xlu0 %896  ;;  %v990_v4 = vsub.f32 1.0, %v989_v1 }
 0x2b5   : > { %1437 = vrcp.f32 %v1816_v62  ;;  %v1014_v50 = vand.u32 2147483648, %v1816_v62  ;;  %v1012_v56 = vand.u32 2147483647, %v1816_v62 }
 0x2b6   : > { %v991_v7 = vmul.f32 %v1818_v63, %v990_v4 }
 0x2b8   : > { %v891_v0 = vpop.xlane.xlu1 %890  ;;  %v1831_v17 = vadd.f32 %v1818_v63, %v991_v7  ;;  %v1248_v7 = vld [vmem:[%s1953_s9 + $0x70] sm:$0xff] }
 0x2b9   : > { %1439 = vrcp.f32 %v891_v0  ;;  %v982_v19 = vand.u32 2147483647, %v891_v0  ;;  %v984_v22 = vand.u32 2147483648, %v891_v0  ;;  %vm978_vm4 = vweird.f32 %v891_v0 }
 0x2bb   : > { %v1823_v5 = vpop.eup %1437  ;;  %vm1839_vm7 = vcmp.eq.f32.partialorder %v982_v19, 8.507059e+37  ;;  %v985_v36 = vor.u32 1.1754944e-38, %v984_v22  ;;  %v1237_v19 = vld [vmem:[%s1953_s9 + $0x18] sm:$0xff]  ;;  %v1234_v22 = vld [vmem:[%s1953_s9] sm:$0xff] }
 0x2bc   : > { %v888_v2 = vpop.xlane.xlu0 %887  ;;  %v885_v3 = vpop.xlane.xlu2 %884  ;;  %v1004_v8 = vmul.f32 %v1823_v5, %v1816_v62  ;;  %vm1009_vm10 = vweird.f32 %v1823_v5 }
 0x2bd   : > { %1441 = vrcp.f32 %v888_v2  ;;  %v967_v24 = vand.u32 2147483647, %v888_v2  ;;  %v969_v25 = vand.u32 2147483648, %v888_v2  ;;  %v952_v28 = vand.u32 2147483647, %v885_v3 }
 0x2be   : > { %1443 = vrcp.f32 %v885_v3  ;;  %v1005_v18 = vsub.f32 1.0, %v1004_v8  ;;  %v954_v29 = vand.u32 2147483648, %v885_v3  ;;  %vm963_vm9 = vweird.f32 %v888_v2  ;;  %v1247_v8 = vld [vmem:[%s1953_s9 + $0x68] sm:$0xff] }
 0x2bf   : > { %v1440_v60 = vpop.eup %1439  ;;  %v970_v40 = vor.u32 1.1754944e-38, %v969_v25  ;;  %vm948_vm12 = vweird.f32 %v885_v3  ;;  %vm968_vm13 = vcmp.eq.f32.partialorder %v967_v24, 8.507059e+37 }
 0x2c0   : > { %v974_v6 = vmul.f32 %v1440_v60, %v891_v0  ;;  %vm979_vm3 = vweird.f32 %v1440_v60  ;;  %v1006_v30 = vmul.f32 %v1823_v5, %v1005_v18  ;;  %v955_v45 = vor.u32 1.1754944e-38, %v954_v29  ;;  %v1238_v18 = vld [vmem:[%s1953_s9 + $0x20] sm:$0xff] }
 0x2c1   : > { %vm1835_vm6 = vmor %vm978_vm4, %vm979_vm3  ;;  %vm953_vm3 = vcmp.eq.f32.partialorder %v952_v28, 8.507059e+37 }
 0x2c2   : > { %v975_v10 = vsub.f32 1.0, %v974_v6  ;;  %v1007_v46 = vadd.f32 %v1823_v5, %v1006_v30  ;;  %vm1856_vm4 = vmor %vm993_vm1, %vm994_vm15  ;;  %vm998_vm15 = vcmp.eq.f32.partialorder %v997_v49, 8.507059e+37  ;;  %vm1013_vm1 = vcmp.eq.f32.partialorder %v1012_v56, 8.507059e+37 }
 0x2c3   : > { %v1442_v11 = vpop.eup %1441 }
 0x2c4   : > { %v1444_v12 = vpop.eup %1443  ;;  %v976_v14 = vmul.f32 %v1440_v60, %v975_v10  ;;  %v959_v15 = vmul.f32 %v1442_v11, %v888_v2  ;;  %v612_v16 = vpop.permute.xlu2 %611  ;;  %vm964_vm5 = vweird.f32 %v1442_v11  ;;  %v1246_v10 = vld [vmem:[%s1953_s9 + $0x60] sm:$0xff] }
 0x2c5   : > { %v944_v20 = vmul.f32 %v1444_v12, %v885_v3  ;;  %1174 = vmatpush.msra.mxu0 %v612_v16  ;;  %vm949_vm8 = vweird.f32 %v1444_v12  ;;  %vm965_vm11 = vmor %vm963_vm9, %vm964_vm5  ;;  %vm1008_vm5 = vweird.f32 %v1816_v62  ;;  %v1038_v2 = vpop.f32.mrf.mxu3  ;;  %v1240_v16 = vld [vmem:[%s1953_s9 + $0x30] sm:$0xff] }
 0x2c6   : > { %v977_v21 = vadd.f32 %v1440_v60, %v976_v14  ;;  %v960_v23 = vsub.f32 1.0, %v959_v15  ;;  %vm950_vm14 = vmor %vm948_vm12, %vm949_vm8  ;;  %v1242_v14 = vld [vmem:[%s1953_s9 + $0x40] sm:$0xff]  ;;  %v1241_v15 = vld [vmem:[%s1953_s9 + $0x38] sm:$0xff] }
 0x2c7   : > { %v945_v26 = vsub.f32 1.0, %v944_v20  ;;  %v1236_v20 = vld [vmem:[%s1953_s9 + $0x10] sm:$0xff] }
 0x2c8   : > { %v961_v27 = vmul.f32 %v1442_v11, %v960_v23  ;;  %v981_v35 = vsel %vm1835_vm6, %v1440_v60, %v977_v21  ;;  %vm1010_vm6 = vmor %vm1008_vm5, %vm1009_vm10  ;;  %v1235_v21 = vld [vmem:[%s1953_s9 + $0x8] sm:$0xff] }
 0x2c9   : > { %v946_v31 = vmul.f32 %v1444_v12, %v945_v26  ;;  %v986_v47 = vsel %vm1839_vm7, %v985_v36, %v981_v35  ;;  %v1011_v54 = vsel %vm1010_vm6, %v1823_v5, %v1007_v46  ;;  %vm1231_vm7 = vcmask 785408   ;;  %v1412_v36 = vld [vmem:[%s1954_s10] ss:$0 sm:$0xff] }
 0x2ca   : > { %v962_v37 = vadd.f32 %v1442_v11, %v961_v27  ;;  %v987_v61 = vmul.f32 %v1791_v39, %v986_v47 }
 0x2cb   : > { %v947_v41 = vadd.f32 %v1444_v12, %v946_v31 }
 0x2cc   : > { %v966_v42 = vsel %vm965_vm11, %v1442_v11, %v962_v37  ;;  %v1245_v11 = vld [vmem:[%s1953_s9 + $0x58] sm:$0xff] }
 0x2cd   : > { %v971_v48 = vsel %vm968_vm13, %v970_v40, %v966_v42  ;;  %v951_v38 = vsel %vm950_vm14, %v1444_v12, %v947_v41  ;;  %v1061_v3 = vpop.f32.mrf.mxu3  ;;  %v1244_v12 = vld [vmem:[%s1953_s9 + $0x50] sm:$0xff] }
 0x2ce   : > { %v956_v52 = vsel %vm953_vm3, %v955_v45, %v951_v38  ;;  %v972_v53 = vmul.f32 %v1796_v43, %v971_v48  ;;  %v996_v43 = vsel %vm1856_vm4, %v1818_v63, %v1831_v17  ;;  %v1239_v17 = vld [vmem:[%s1953_s9 + $0x28] sm:$0xff] }
 0x2cf   : > { %v614_v58 = vpop.permute.xlu0 %613  ;;  %v957_v59 = vmul.f32 %v1799_v44, %v956_v52  ;;  %v1015_v44 = vor.u32 1.1754944e-38, %v1014_v50  ;;  %v1001_v62 = vsel %vm998_vm15, %v1000_v51, %v996_v43 }
 0x2d0   : > { %v608_v57 = vpop.permute.xlu1 %607  ;;  %1392 = vmatmul.msk.f32.vlgmr.msrb.gmra.mxu0 %vm825_vm2, %v972_v53  ;;  %1197 = vmatpush.msrb.mxu1 %v614_v58  ;;  %v1002_v0 = vmul.f32 %v1779_v9, %v1001_v62 }
 0x2d1   : > { %1391 = vmatmul.msk.f32.vlgmr.msra.gmra.mxu1 %vm825_vm2, %v957_v59  ;;  %1151 = vmatpush.msra.mxu3 %v608_v57  ;;  %v1016_v63 = vsel %vm1013_vm1, %v1015_v44, %v1011_v54 }
 0x2d2   : > { %1393 = vmatmul.msk.f32.vlgmr.msra.gmra.mxu3 %vm825_vm2, %v987_v61  ;;  %v1017_v1 = vmul.f32 %v1787_v32, %v1016_v63  ;;  %v1249_v32 = vld [vmem:[%s1953_s9 + $0x78] sm:$0xff] }
 0x2d3   : > { %1254 = vmatpush.msrb.mxu2 %v1249_v32 }
 0x2d5   : > { %1255 = vmatpush.msrb.mxu2 %v1248_v7 }
 0x2d7   : > { %1256 = vmatpush.msrb.mxu2 %v1247_v8 }
 0x2d8   : > { %1394 = vmatmul.msk.f32.vlgmr.msra.gmra.mxu0 %vm825_vm2, %v1002_v0 }
 0x2d9   : > { %1395 = vmatmul.msk.f32.vlgmr.msrb.gmra.mxu1 %vm825_vm2, %v1017_v1  ;;  %1257 = vmatpush.msrb.mxu2 %v1246_v10  ;;  %vm1228_vm2 = vcmask 523264  }
 0x2db   : > { %1258 = vmatpush.msrb.mxu2 %v1245_v11 }
 0x2dd   : > { %1259 = vmatpush.msrb.mxu2 %v1244_v12 }
 0x2df   : > { %1260 = vmatpush.msrb.mxu2 %v1243_v13 }
 0x2e1   : > { %1261 = vmatpush.msrb.mxu2 %v1242_v14 }
 0x2e3   : > { %1262 = vmatpush.msrb.mxu2 %v1241_v15 }
 0x2e5   : > { %1263 = vmatpush.msrb.mxu2 %v1240_v16 }
 0x2e7   : > { %1264 = vmatpush.msrb.mxu2 %v1239_v17 }
 0x2e9   : > { %1265 = vmatpush.msrb.mxu2 %v1238_v18 }
 0x2eb   : > { %1266 = vmatpush.msrb.mxu2 %v1237_v19 }
 0x2ed   : > { %1267 = vmatpush.msrb.mxu2 %v1236_v20 }
 0x2ef   : > { %1268 = vmatpush.msrb.mxu2 %v1235_v21 }
 0x2f1   : > { %1269 = vmatpush.msrb.mxu2 %v1234_v22 }
 0x331   : > { %v1084_v39 = vpop.f32.mrf.mxu0 }
 0x332   : > { %1204 = vrot.lane.b32.xlu2 %v1084_v39, %s1455_s28 }
 0x34d   : > { %v1130_v4 = vpop.f32.mrf.mxu0 }
 0x34e   : > { %v1107_v5 = vpop.f32.mrf.mxu1  ;;  %1212 = vrot.lane.b32.xlu1 %v1130_v4, %s1453_s26 }
 0x34f   : > { %1206 = vrot.lane.b32.xlu2 %v1107_v5, %s1455_s28 }
 0x355   : > { %v1153_v60 = vpop.f32.mrf.mxu3  ;;  %v1176_v6 = vpop.f32.mrf.mxu0 }
 0x356   : > { %1214 = vrot.lane.b32.xlu1 %v1153_v60, %s1453_s26  ;;  %1220 = vrot.lane.b32.xlu0 %v1176_v6, %s1454_s27  ;;  %v1199_v9 = vpop.f32.mrf.mxu1 }
 0x35e   : > { %1222 = vrot.lane.b32.xlu0 %v1199_v9, %s1454_s27 }
 0x38c   : > { %v1205_v24 = vpop.permute.xlu2 %1204 }
 0x38d   : > { %v1226_v25 = vsel %vm617_vm0, %v1038_v2, %v1205_v24 }
 0x3a9   : > { %v1207_v29 = vpop.permute.xlu2 %1206 }
 0x3aa   : > { %v1227_v33 = vsel %vm617_vm0, %v1061_v3, %v1207_v29 }
 0x3c0   : > { %v1213_v23 = vpop.permute.xlu1 %1212 }
 0x3c1   : > { %v1229_v26 = vsel %vm1228_vm2, %v1226_v25, %v1213_v23 }
 0x3c8   : > { %v1221_v27 = vpop.permute.xlu0 %1220  ;;  %v1215_v30 = vpop.permute.xlu1 %1214 }
 0x3c9   : > { %v1232_v28 = vsel %vm1231_vm7, %v1229_v26, %v1221_v27  ;;  %v1230_v34 = vsel %vm1228_vm2, %v1227_v33, %v1215_v30 }
 0x3ca   : > { %1270 = vmatmul.f32.vlgmr.msrb.gmra.mxu2 %v1232_v28 }
 0x3d0   : > { %v1223_v31 = vpop.permute.xlu0 %1222 }
 0x3d1   : > { %v1233_v35 = vsel %vm1231_vm7, %v1230_v34, %v1223_v31 }
 0x3d2   : > { %1273 = vmatmul.f32.gmra.mxu2 %v1233_v35 }
 0x44d   : > { %v1271_v37 = vpop.f32.mrf.mxu2 }
 0x44e   : > { %v1272_v40 = vadd.f32 %v1412_v36, %v1271_v37 }
 0x450   : > { %1277 = vst [vmem:[%s432_s24] sm:$0xff] %v1272_v40 }
 0x455   : > { %v1274_v41 = vpop.f32.mrf.mxu2 }
 0x456   : > { %v1275_v42 = vadd.f32 %v1412_v36, %v1274_v41 }
 0x458   : > { %1278 = vst [vmem:[%s432_s24 + $0x8] sm:$0xff] %v1275_v42 }
 0x459 PF: > { %s21_s17 = sadd.s32 1, %s1451_s17  }
 0x45a   : > { %p18_p4 = scmp.ge.s32.totalorder %s21_s17, 4  }
 0x45c   :  { %20 = sbr.rel (!%p18_p4) target bundleno = 1 (0x1), region = 100 }

</bundles_post_ra>
